<compile_context>
chip_gen: v5e
topology: v5e:2x2
jax: 0.10.0
libtpu: 0.0.40
codegen_flags: <defaults>
</compile_context>

<pallas_src>
import functools

import jax
import jax.numpy as jnp
from jax.experimental import pallas as pl
from jax.experimental.pallas import tpu as pltpu


# ----------------------------------------------------------------------------
# Generic lane-dense fused conv-as-matmul kernel:
#   out(Cfin, tm) = [post_w @] relu( sum_g W_g @ X_g + bias [+ add] )
# ----------------------------------------------------------------------------
def _make_kernel(n_groups, has_add, has_post, relu):
    def kernel(*refs):
        pos = 0
        xs = refs[pos:pos + n_groups]; pos += n_groups
        ws = refs[pos:pos + n_groups]; pos += n_groups
        bias_ref = refs[pos]; pos += 1
        add_ref = None
        if has_add:
            add_ref = refs[pos]; pos += 1
        post_ref = None
        if has_post:
            post_ref = refs[pos]; pos += 1
        out_ref = refs[pos]

        acc = jnp.dot(ws[0][...], xs[0][...], preferred_element_type=jnp.float32)
        for g in range(1, n_groups):
            acc = acc + jnp.dot(ws[g][...], xs[g][...],
                                preferred_element_type=jnp.float32)
        acc = acc + bias_ref[...]                       # full-width VPU add
        if has_add:
            acc = acc + add_ref[...].astype(jnp.float32)
        if relu:
            acc = jnp.maximum(acc, 0.0)
        if has_post:                                    # fused 1x1 post-projection
            acc = jnp.dot(post_ref[...], acc.astype(post_ref.dtype),
                          preferred_element_type=jnp.float32)
        out_ref[...] = acc.astype(out_ref.dtype)

    return kernel


@functools.lru_cache(maxsize=1)
def _vmem_limit_bytes():
    cap = 64 * 1024 * 1024
    try:
        cap = int(pltpu.get_tpu_info().vmem_capacity_bytes)
    except Exception:
        pass
    # <= ~48 MiB on v7x (64 MiB physical VMEM); up to 96 MiB on v5e/v6e (128 MiB).
    return min(96 * 1024 * 1024, (cap * 3) // 4)


def _pick_tm(m, col_bytes, fixed_bytes, budget):
    """Largest lane-dense tile that fits the VMEM budget and gives >=4 grid
    steps (>=2 per v7x TensorCore); falls back to >=2 steps, then one block."""
    best2 = None
    for tm in (4096, 2048, 1024, 512, 256, 128):
        if tm >= m or m % tm != 0:
            continue
        if fixed_bytes + 2 * col_bytes * tm > budget:   # double-buffered streams
            continue
        if m // tm >= 4:
            return tm
        if best2 is None:
            best2 = tm
    return best2 if best2 is not None else m


def fused_conv_matmul(xs, ws, bias, *, add=None, post_w=None, relu=True,
                      out_dtype=jnp.bfloat16):
    """xs[g]: (K_g, M), ws[g]: (Cout, K_g) f32 (BN pre-folded), bias: (Cout,),
    add: (Cfin, M), post_w: (Cfin, Cout).  Returns (Cfin, M) in out_dtype."""
    n_groups = len(xs)
    m = xs[0].shape[1]
    cout = ws[0].shape[0]
    cfin = post_w.shape[0] if post_w is not None else cout

    out_bytes = 4 if out_dtype == jnp.float32 else 2
    # Per-output-column streamed bytes (bf16 X, f32 bias, bf16 add, out stream).
    col_bytes = 2 * sum(int(x.shape[0]) for x in xs) + 4 * cout + out_bytes * cfin
    if add is not None:
        col_bytes += 2 * cfin
    # Tile-invariant operands (conservatively counted double-buffered).
    fixed_bytes = 2 * sum(2 * int(w.size) for w in ws)
    if post_w is not None:
        fixed_bytes += 2 * 2 * int(post_w.size)

    vmem_limit = _vmem_limit_bytes()
    tm = _pick_tm(m, col_bytes, fixed_bytes, vmem_limit // 2)
    grid = (m // tm,)

    operands, in_specs = [], []
    for x in xs:
        operands.append(x.astype(jnp.bfloat16))
        in_specs.append(pl.BlockSpec((x.shape[0], tm), lambda i: (0, i)))
    for w in ws:
        operands.append(w.astype(jnp.bfloat16))
        in_specs.append(pl.BlockSpec(w.shape, lambda i: (0, 0)))
    # Pre-broadcast bias -> full-width block (no 1-lane masked load in kernel).
    operands.append(jnp.broadcast_to(
        bias.astype(jnp.float32).reshape(cout, 1), (cout, tm)))
    in_specs.append(pl.BlockSpec((cout, tm), lambda i: (0, 0)))
    if add is not None:
        operands.append(add.astype(jnp.bfloat16))
        in_specs.append(pl.BlockSpec((cfin, tm), lambda i: (0, i)))
    if post_w is not None:
        operands.append(post_w.astype(jnp.bfloat16))
        in_specs.append(pl.BlockSpec(post_w.shape, lambda i: (0, 0)))

    kernel = _make_kernel(n_groups, add is not None, post_w is not None, relu)
    return pl.pallas_call(
        kernel,
        out_shape=jax.ShapeDtypeStruct((cfin, m), out_dtype),
        grid=grid,
        in_specs=in_specs,
        out_specs=pl.BlockSpec((cfin, tm), lambda i: (0, i)),
        compiler_params=pltpu.CompilerParams(
            dimension_semantics=("parallel",),
            vmem_limit_bytes=vmem_limit,
        ),
    )(*operands)


# ----------------------------------------------------------------------------
# Spatial glue (exact, linear; features live in (C, N, H, W) layout).
# ----------------------------------------------------------------------------
def avg_pool(x, s):
    c, n, h, w = x.shape
    return x.reshape(c, n, h // s, s, w // s, s).mean(axis=(3, 5))


def _interp_matrix(out_size, in_size):
    if in_size == 1:
        return jnp.ones((out_size, 1), jnp.float32)
    if out_size == 1:
        return jnp.zeros((1, in_size), jnp.float32).at[0, 0].set(1.0)
    pos = jnp.arange(out_size, dtype=jnp.float32) * ((in_size - 1) / (out_size - 1))
    lo = jnp.minimum(jnp.floor(pos).astype(jnp.int32), in_size - 2)
    hi = lo + 1
    t = pos - lo.astype(jnp.float32)
    m = jnp.zeros((out_size, in_size), jnp.float32)
    m = m.at[jnp.arange(out_size), lo].add(1.0 - t)
    m = m.at[jnp.arange(out_size), hi].add(t)
    return m


def bilinear_upsample(x, h_out, w_out):
    # F.interpolate / UpsamplingBilinear2d with align_corners=True is linear.
    _, _, h, w = x.shape
    ah = _interp_matrix(h_out, h).astype(x.dtype)
    aw = _interp_matrix(w_out, w).astype(x.dtype)
    return jnp.einsum("Hh,cnhw,Ww->cnHW", ah, x, aw)


# Inference BatchNorm folding: conv weight is (Cout, ...).
def fold_bn(w, conv_bias, gamma, beta, mean, var, eps=1e-5):
    s = gamma / jnp.sqrt(var + eps)
    wf = w * s.reshape((-1,) + (1,) * (w.ndim - 1))
    bf = beta + s * (conv_bias - mean)
    return wf, bf


# ----------------------------------------------------------------------------
# MSA_Block_01(a, b): multi-scale block over cat(a, b) -> out_ch channels.
# ----------------------------------------------------------------------------
def _branch_pallas(pa, pb, bp, n, hp, wp):
    mp = n * hp * wp
    # 1x1 reduce conv + BN + ReLU, grouped over the (a, b) concat split.
    y1 = fused_conv_matmul(
        [pa.reshape(pa.shape[0], mp), pb.reshape(pb.shape[0], mp)],
        [bp["w1a"], bp["w1b"]], bp["b1"], relu=True, out_dtype=jnp.bfloat16)
    cr = y1.shape[0]
    y1 = y1.reshape(cr, n, hp, wp)
    xp = jnp.pad(y1, ((0, 0), (0, 0), (1, 1), (1, 1)))
    # Single pre-stacked (9*cr, mp) tap slab -> one long-K matmul (no 9 DMA
    # streams / 9-dot add chain); the fuse-conv branch block is folded in as a
    # post 1x1 projection before upsampling (linear ops commute).
    taps = jnp.concatenate(
        [xp[:, :, dy:dy + hp, dx:dx + wp] for dy in range(3) for dx in range(3)],
        axis=0).reshape(9 * cr, mp)
    z = fused_conv_matmul([taps], [bp["w3cat"]], bp["b3"],
                          post_w=bp["wf_branch"], relu=True,
                          out_dtype=jnp.bfloat16)
    return z.reshape(-1, n, hp, wp)


def _branch_xla(pa, pb, bp, n, hp, wp):
    # Tiny pooled maps (sub-128-lane M): plain XLA in f32, no Pallas launch.
    x = jnp.concatenate([pa, pb], axis=0).astype(jnp.float32)
    w1 = jnp.concatenate([bp["w1a"], bp["w1b"]], axis=1)
    y1 = jnp.einsum("oc,cnhw->onhw", w1, x) + bp["b1"][:, None, None, None]
    y1 = jnp.maximum(y1, 0.0)
    cr = y1.shape[0]
    xp = jnp.pad(y1, ((0, 0), (0, 0), (1, 1), (1, 1)))
    z = jnp.broadcast_to(bp["b3"][:, None, None, None], (cr, n, hp, wp))
    for g in range(9):
        dy, dx = g // 3, g % 3
        wg = bp["w3cat"][:, g * cr:(g + 1) * cr]
        z = z + jnp.einsum("oc,cnhw->onhw", wg, xp[:, :, dy:dy + hp, dx:dx + wp])
    z = jnp.maximum(z, 0.0)
    return jnp.einsum("fc,cnhw->fnhw", bp["wf_branch"], z)


def msa_block_forward(a, b, p, sizes, *, pallas_min_mp=256):
    a = a.astype(jnp.bfloat16)
    b = b.astype(jnp.bfloat16)
    c_a, n, h, w = a.shape
    m = n * h * w
    a_flat = a.reshape(c_a, m)
    b_flat = b.reshape(b.shape[0], m)

    add = None
    for i, s in enumerate(sizes):
        bp = p["branches"][i]
        pa, pb = avg_pool(a, s), avg_pool(b, s)
        hp, wp = h // s, w // s
        mp = n * hp * wp
        if mp >= pallas_min_mp and mp % 128 == 0:
            z = _branch_pallas(pa, pb, bp, n, hp, wp)
        else:
            z = _branch_xla(pa, pb, bp, n, hp, wp)
        up = bilinear_upsample(z.astype(jnp.bfloat16), h, w).reshape(-1, m)
        add = up if add is None else add + up

    # Final fuse 1x1 conv (+BN) + ReLU; branch contributions enter additively.
    out = fused_conv_matmul([a_flat, b_flat], [p["wfa"], p["wfb"]], p["bf"],
                            add=add, relu=True, out_dtype=jnp.float32)
    return out.reshape(-1, n, h, w)


def decoder_msb_unet_forward(conv2_2, conv3_3, conv5_x, params, sizes):
    _, _, h5, w5 = conv5_x.shape
    up5 = bilinear_upsample(conv5_x.astype(jnp.bfloat16), 2 * h5, 2 * w5)
    x3 = msa_block_forward(conv3_3, up5, params["M3_5"], sizes)
    _, _, h3, w3 = x3.shape
    up3 = bilinear_upsample(x3.astype(jnp.bfloat16), 2 * h3, 2 * w3)
    x2 = msa_block_forward(conv2_2, up3, params["M2_3"], sizes)
    return x2, x3


# ----------------------------------------------------------------------------
# Pure-f32 JAX reference (same folded parameters, no Pallas / no bf16).
# ----------------------------------------------------------------------------
def ref_msa_block(a, b, p, sizes):
    a = a.astype(jnp.float32)
    b = b.astype(jnp.float32)
    _, n, h, w = a.shape
    x_cat = jnp.concatenate([a, b], axis=0)
    ups = []
    for i, s in enumerate(sizes):
        bp = p["branches"][i]
        xp_ = avg_pool(x_cat, s)
        hp, wp = h // s, w // s
        w1 = jnp.concatenate([bp["w1a"], bp["w1b"]], axis=1)
        y1 = jnp.maximum(jnp.einsum("oc,cnhw->onhw", w1, xp_)
                         + bp["b1"][:, None, None, None], 0.0)
        cr = y1.shape[0]
        pad = jnp.pad(y1, ((0, 0), (0, 0), (1, 1), (1, 1)))
        z = jnp.broadcast_to(bp["b3"][:, None, None, None], y1.shape)
        for g in range(9):
            dy, dx = g // 3, g % 3
            z = z + jnp.einsum("oc,cnhw->onhw", bp["w3cat"][:, g * cr:(g + 1) * cr],
                               pad[:, :, dy:dy + hp, dx:dx + wp])
        z = jnp.maximum(z, 0.0)
        ups.append(bilinear_upsample(z, h, w))
    cat = jnp.concatenate([x_cat] + ups, axis=0)
    wf = jnp.concatenate([p["wfa"], p["wfb"]]
                         + [br["wf_branch"] for br in p["branches"]], axis=1)
    out = jnp.einsum("oc,cnhw->onhw", wf, cat) + p["bf"][:, None, None, None]
    return jnp.maximum(out, 0.0)


def ref_decoder(conv2_2, conv3_3, conv5_x, params, sizes):
    _, _, h5, w5 = conv5_x.shape
    up5 = bilinear_upsample(conv5_x, 2 * h5, 2 * w5)
    x3 = ref_msa_block(conv3_3, up5, params["M3_5"], sizes)
    _, _, h3, w3 = x3.shape
    up3 = bilinear_upsample(x3, 2 * h3, 2 * w3)
    x2 = ref_msa_block(conv2_2, up3, params["M2_3"], sizes)
    return x2, x3


# ----------------------------------------------------------------------------
# Parameter construction (deterministic, BN folded, fuse conv split/folded).
# ----------------------------------------------------------------------------
def _rand(key, shape, scale=0.1):
    return scale * jax.random.normal(key, shape, dtype=jnp.float32)


def make_msa_params(key, c_a, c_b, out_ch, sizes, reduction=4):
    in_ch = c_a + c_b
    cr = max(in_ch // reduction, 1)
    n_br = len(sizes)
    ks = iter(jax.random.split(key, 12 * n_br + 6))
    branches = []
    for _ in sizes:
        w1, b1 = _rand(next(ks), (cr, in_ch)), _rand(next(ks), (cr,))
        g1, be1 = 1.0 + _rand(next(ks), (cr,)), _rand(next(ks), (cr,))
        m1, v1 = _rand(next(ks), (cr,)), 1.0 + jnp.abs(_rand(next(ks), (cr,)))
        w1f, b1f = fold_bn(w1, b1, g1, be1, m1, v1)

        w3, b3 = _rand(next(ks), (cr, cr, 3, 3)), _rand(next(ks), (cr,))
        g3, be3 = 1.0 + _rand(next(ks), (cr,)), _rand(next(ks), (cr,))
        m3, v3 = _rand(next(ks), (cr,)), 1.0 + jnp.abs(_rand(next(ks), (cr,)))
        w3f, b3f = fold_bn(w3, b3, g3, be3, m3, v3)
        # K-concatenated 3x3 tap weights: (cr, 9*cr), tap order (dy, dx).
        w3cat = jnp.concatenate(
            [w3f[:, :, dy, dx] for dy in range(3) for dx in range(3)], axis=1)

        branches.append(dict(w1a=w1f[:, :c_a], w1b=w1f[:, c_a:], b1=b1f,
                             w3cat=w3cat, b3=b3f))

    cf_in = in_ch + n_br * cr
    wf, bfc = _rand(next(ks), (out_ch, cf_in)), _rand(next(ks), (out_ch,))
    gf, bef = 1.0 + _rand(next(ks), (out_ch,)), _rand(next(ks), (out_ch,))
    mf, vf = _rand(next(ks), (out_ch,)), 1.0 + jnp.abs(_rand(next(ks), (out_ch,)))
    wff, bff = fold_bn(wf, bfc, gf, bef, mf, vf)

    for i, br in enumerate(branches):
        br["wf_branch"] = wff[:, in_ch + i * cr: in_ch + (i + 1) * cr]
    return dict(branches=branches,
                wfa=wff[:, :c_a], wfb=wff[:, c_a:in_ch], bf=bff)


if __name__ == "__main__":
    # Small shapes consistent with Decoder_MSB_UNet(filters=[128,256,512]):
    # filters scaled down to [8,16,32]; UNet spatial pyramid 32 / 16 / 8.
    filters = [8, 16, 32]
    n_batch, h2, w2 = 2, 32, 32
    sizes = (2, 4, 8, 16)

    key = jax.random.PRNGKey(0)
    k_in, k_p3, k_p2 = jax.random.split(key, 3)
    ka, kb, kc = jax.random.split(k_in, 3)
    conv2_2 = jax.random.normal(ka, (n_batch, filters[0], h2, w2), jnp.float32)
    conv3_3 = jax.random.normal(kb, (n_batch, filters[1], h2 // 2, w2 // 2), jnp.float32)
    conv5_x = jax.random.normal(kc, (n_batch, filters[2], h2 // 4, w2 // 4), jnp.float32)

    params = {
        "M3_5": make_msa_params(k_p3, filters[1], filters[2], filters[1], sizes),
        "M2_3": make_msa_params(k_p2, filters[0], filters[1], filters[0], sizes),
    }

    # PyTorch NCHW -> (C, N, H, W) so flattening gives lane-dense (C, M) matmuls.
    def to_cm(x):
        return jnp.transpose(x, (1, 0, 2, 3))

    def to_nchw(x):
        return jnp.transpose(x, (1, 0, 2, 3))

    a, b, c = to_cm(conv2_2), to_cm(conv3_3), to_cm(conv5_x)

    fwd = jax.jit(lambda a, b, c: decoder_msb_unet_forward(a, b, c, params, sizes))
    x2, x3 = fwd(a, b, c)
    x2 = jax.block_until_ready(to_nchw(x2))
    x3 = jax.block_until_ready(to_nchw(x3))

    assert x2.shape == (n_batch, filters[0], h2, w2), x2.shape
    assert x3.shape == (n_batch, filters[1], h2 // 2, w2 // 2), x3.shape
    assert bool(jnp.all(jnp.isfinite(x2))) and bool(jnp.all(jnp.isfinite(x3)))

    # Pure-f32 JAX reference; tolerance accounts for bf16 streams / f32 accum.
    r2, r3 = ref_decoder(a, b, c, params, sizes)
    r2, r3 = to_nchw(r2), to_nchw(r3)

    def max_rel_err(x, r):
        return float(jnp.max(jnp.abs(x.astype(jnp.float32) - r))
                     / (jnp.max(jnp.abs(r)) + 1e-6))

    e3, e2 = max_rel_err(x3, r3), max_rel_err(x2, r2)
    assert e3 < 0.1, f"x3 rel err {e3}"
    assert e2 < 0.1, f"x2 rel err {e2}"
    print("KERNEL_OK")
</pallas_src>

<mosaic_0001>
module attributes {stable_mosaic.version = 11 : i64} {
  func.func @kernel(%arg0: i32, %arg1: memref<16x128xbf16, #tpu.memory_space<vmem>>, %arg2: memref<32x128xbf16, #tpu.memory_space<vmem>>, %arg3: memref<16x16xbf16, #tpu.memory_space<vmem>>, %arg4: memref<16x32xbf16, #tpu.memory_space<vmem>>, %arg5: memref<16x128xf32, #tpu.memory_space<vmem>>, %arg6: memref<16x128xbf16, #tpu.memory_space<vmem>>, %arg7: memref<16x128xf32, #tpu.memory_space<vmem>>) attributes {dimension_semantics = [#tpu.dimension_semantics<parallel>], iteration_bounds = array<i64: 4>, scalar_prefetch = 0 : i64, scratch_operands = 0 : i64, tpu.core_type = #tpu.core_type<tc>, window_params = [{transform_indices = @transform_0, window_bounds = array<i64: 16, 128>}, {transform_indices = @transform_1, window_bounds = array<i64: 32, 128>}, {pipeline_mode = #tpu.pipeline_mode<synchronous>, transform_indices = @transform_2, window_bounds = array<i64: 16, 16>}, {pipeline_mode = #tpu.pipeline_mode<synchronous>, transform_indices = @transform_3, window_bounds = array<i64: 16, 32>}, {pipeline_mode = #tpu.pipeline_mode<synchronous>, transform_indices = @transform_4, window_bounds = array<i64: 16, 128>}, {transform_indices = @transform_5, window_bounds = array<i64: 16, 128>}, {transform_indices = @transform_6, window_bounds = array<i64: 16, 128>}]} {
    %c0 = arith.constant 0 : index
    %c0_0 = arith.constant 0 : index
    %0 = vector.load %arg3[%c0, %c0_0] : memref<16x16xbf16, #tpu.memory_space<vmem>>, vector<16x16xbf16>
    %c0_1 = arith.constant 0 : index
    %c0_2 = arith.constant 0 : index
    %1 = vector.load %arg1[%c0_1, %c0_2] : memref<16x128xbf16, #tpu.memory_space<vmem>>, vector<16x128xbf16>
    %cst = arith.constant dense<0.000000e+00> : vector<16x128xf32>
    %2 = tpu.matmul %0, %1, %cst {dimension_numbers = #tpu.dot_dimension_numbers<[1], [0], [0], [1], [0, 0, 1, 1], [], []>} : vector<16x16xbf16>, vector<16x128xbf16>, vector<16x128xf32> -> vector<16x128xf32>
    %c0_3 = arith.constant 0 : index
    %c0_4 = arith.constant 0 : index
    %3 = vector.load %arg4[%c0_3, %c0_4] : memref<16x32xbf16, #tpu.memory_space<vmem>>, vector<16x32xbf16>
    %c0_5 = arith.constant 0 : index
    %c0_6 = arith.constant 0 : index
    %4 = vector.load %arg2[%c0_5, %c0_6] : memref<32x128xbf16, #tpu.memory_space<vmem>>, vector<32x128xbf16>
    %cst_7 = arith.constant dense<0.000000e+00> : vector<16x128xf32>
    %5 = tpu.matmul %3, %4, %cst_7 {dimension_numbers = #tpu.dot_dimension_numbers<[1], [0], [0], [1], [0, 0, 1, 1], [], []>} : vector<16x32xbf16>, vector<32x128xbf16>, vector<16x128xf32> -> vector<16x128xf32>
    %6 = arith.addf %2, %5 : vector<16x128xf32>
    %c0_8 = arith.constant 0 : index
    %c0_9 = arith.constant 0 : index
    %7 = vector.load %arg5[%c0_8, %c0_9] : memref<16x128xf32, #tpu.memory_space<vmem>>, vector<16x128xf32>
    %8 = arith.addf %6, %7 : vector<16x128xf32>
    %c0_10 = arith.constant 0 : index
    %c0_11 = arith.constant 0 : index
    %9 = vector.load %arg6[%c0_10, %c0_11] : memref<16x128xbf16, #tpu.memory_space<vmem>>, vector<16x128xbf16>
    %10 = arith.extf %9 : vector<16x128xbf16> to vector<16x128xf32>
    %11 = arith.addf %8, %10 : vector<16x128xf32>
    %cst_12 = arith.constant 0.000000e+00 : f32
    %12 = vector.broadcast %cst_12 : f32 to vector<16x128xf32>
    %13 = arith.maximumf %11, %12 : vector<16x128xf32>
    %c0_13 = arith.constant 0 : index
    %c0_14 = arith.constant 0 : index
    %14 = vector.load %arg7[%c0_13, %c0_14] : memref<16x128xf32, #tpu.memory_space<vmem>>, vector<16x128xf32>
    tpu.vector_store %arg7[%c0_13, %c0_14], %13 {strides = array<i32>} : memref<16x128xf32, #tpu.memory_space<vmem>>, vector<16x128xf32>,
    return
  }
  func.func @transform_0(%arg0: i32) -> (i32, i32) {
    %c0_i32 = arith.constant 0 : i32
    %c0_i32_0 = arith.constant 0 : i32
    return %c0_i32, %arg0 : i32, i32
  }
  func.func @transform_1(%arg0: i32) -> (i32, i32) {
    %c0_i32 = arith.constant 0 : i32
    %c0_i32_0 = arith.constant 0 : i32
    return %c0_i32, %arg0 : i32, i32
  }
  func.func @transform_2(%arg0: i32) -> (i32, i32) {
    %c0_i32 = arith.constant 0 : i32
    %c0_i32_0 = arith.constant 0 : i32
    %c0_i32_1 = arith.constant 0 : i32
    return %c0_i32, %c0_i32_0 : i32, i32
  }
  func.func @transform_3(%arg0: i32) -> (i32, i32) {
    %c0_i32 = arith.constant 0 : i32
    %c0_i32_0 = arith.constant 0 : i32
    %c0_i32_1 = arith.constant 0 : i32
    return %c0_i32, %c0_i32_0 : i32, i32
  }
  func.func @transform_4(%arg0: i32) -> (i32, i32) {
    %c0_i32 = arith.constant 0 : i32
    %c0_i32_0 = arith.constant 0 : i32
    %c0_i32_1 = arith.constant 0 : i32
    return %c0_i32, %c0_i32_0 : i32, i32
  }
  func.func @transform_5(%arg0: i32) -> (i32, i32) {
    %c0_i32 = arith.constant 0 : i32
    %c0_i32_0 = arith.constant 0 : i32
    return %c0_i32, %arg0 : i32, i32
  }
  func.func @transform_6(%arg0: i32) -> (i32, i32) {
    %c0_i32 = arith.constant 0 : i32
    %c0_i32_0 = arith.constant 0 : i32
    return %c0_i32, %arg0 : i32, i32
  }
}

module attributes {stable_mosaic.version = 11 : i64} {
  func.func @kernel(%arg0: i32, %arg1: memref<8x128xbf16, #tpu.memory_space<vmem>>, %arg2: memref<16x128xbf16, #tpu.memory_space<vmem>>, %arg3: memref<6x8xbf16, #tpu.memory_space<vmem>>, %arg4: memref<6x16xbf16, #tpu.memory_space<vmem>>, %arg5: memref<6x128xf32, #tpu.memory_space<vmem>>, %arg6: memref<6x128xbf16, #tpu.memory_space<vmem>>) attributes {dimension_semantics = [#tpu.dimension_semantics<parallel>], iteration_bounds = array<i64: 4>, scalar_prefetch = 0 : i64, scratch_operands = 0 : i64, tpu.core_type = #tpu.core_type<tc>, window_params = [{transform_indices = @transform_0, window_bounds = array<i64: 8, 128>}, {transform_indices = @transform_1, window_bounds = array<i64: 16, 128>}, {pipeline_mode = #tpu.pipeline_mode<synchronous>, transform_indices = @transform_2, window_bounds = array<i64: 6, 8>}, {pipeline_mode = #tpu.pipeline_mode<synchronous>, transform_indices = @transform_3, window_bounds = array<i64: 6, 16>}, {pipeline_mode = #tpu.pipeline_mode<synchronous>, transform_indices = @transform_4, window_bounds = array<i64: 6, 128>}, {transform_indices = @transform_5, window_bounds = array<i64: 6, 128>}]} {
    %c0 = arith.constant 0 : index
    %c0_0 = arith.constant 0 : index
    %0 = vector.load %arg3[%c0, %c0_0] : memref<6x8xbf16, #tpu.memory_space<vmem>>, vector<6x8xbf16>
    %c0_1 = arith.constant 0 : index
    %c0_2 = arith.constant 0 : index
    %1 = vector.load %arg1[%c0_1, %c0_2] : memref<8x128xbf16, #tpu.memory_space<vmem>>, vector<8x128xbf16>
    %cst = arith.constant dense<0.000000e+00> : vector<6x128xf32>
    %2 = tpu.matmul %0, %1, %cst {dimension_numbers = #tpu.dot_dimension_numbers<[1], [0], [0], [1], [0, 0, 1, 1], [], []>} : vector<6x8xbf16>, vector<8x128xbf16>, vector<6x128xf32> -> vector<6x128xf32>
    %c0_3 = arith.constant 0 : index
    %c0_4 = arith.constant 0 : index
    %3 = vector.load %arg4[%c0_3, %c0_4] : memref<6x16xbf16, #tpu.memory_space<vmem>>, vector<6x16xbf16>
    %c0_5 = arith.constant 0 : index
    %c0_6 = arith.constant 0 : index
    %4 = vector.load %arg2[%c0_5, %c0_6] : memref<16x128xbf16, #tpu.memory_space<vmem>>, vector<16x128xbf16>
    %cst_7 = arith.constant dense<0.000000e+00> : vector<6x128xf32>
    %5 = tpu.matmul %3, %4, %cst_7 {dimension_numbers = #tpu.dot_dimension_numbers<[1], [0], [0], [1], [0, 0, 1, 1], [], []>} : vector<6x16xbf16>, vector<16x128xbf16>, vector<6x128xf32> -> vector<6x128xf32>
    %6 = arith.addf %2, %5 : vector<6x128xf32>
    %c0_8 = arith.constant 0 : index
    %c0_9 = arith.constant 0 : index
    %7 = vector.load %arg5[%c0_8, %c0_9] : memref<6x128xf32, #tpu.memory_space<vmem>>, vector<6x128xf32>
    %8 = arith.addf %6, %7 : vector<6x128xf32>
    %cst_10 = arith.constant 0.000000e+00 : f32
    %9 = vector.broadcast %cst_10 : f32 to vector<6x128xf32>
    %10 = arith.maximumf %8, %9 : vector<6x128xf32>
    %11 = arith.truncf %10 : vector<6x128xf32> to vector<6x128xbf16>
    %c0_11 = arith.constant 0 : index
    %c0_12 = arith.constant 0 : index
    %12 = vector.load %arg6[%c0_11, %c0_12] : memref<6x128xbf16, #tpu.memory_space<vmem>>, vector<6x128xbf16>
    tpu.vector_store %arg6[%c0_11, %c0_12], %11 {strides = array<i32>} : memref<6x128xbf16, #tpu.memory_space<vmem>>, vector<6x128xbf16>,
    return
  }
  func.func @transform_0(%arg0: i32) -> (i32, i32) {
    %c0_i32 = arith.constant 0 : i32
    %c0_i32_0 = arith.constant 0 : i32
    return %c0_i32, %arg0 : i32, i32
  }
  func.func @transform_1(%arg0: i32) -> (i32, i32) {
    %c0_i32 = arith.constant 0 : i32
    %c0_i32_0 = arith.constant 0 : i32
    return %c0_i32, %arg0 : i32, i32
  }
  func.func @transform_2(%arg0: i32) -> (i32, i32) {
    %c0_i32 = arith.constant 0 : i32
    %c0_i32_0 = arith.constant 0 : i32
    %c0_i32_1 = arith.constant 0 : i32
    return %c0_i32, %c0_i32_0 : i32, i32
  }
  func.func @transform_3(%arg0: i32) -> (i32, i32) {
    %c0_i32 = arith.constant 0 : i32
    %c0_i32_0 = arith.constant 0 : i32
    %c0_i32_1 = arith.constant 0 : i32
    return %c0_i32, %c0_i32_0 : i32, i32
  }
  func.func @transform_4(%arg0: i32) -> (i32, i32) {
    %c0_i32 = arith.constant 0 : i32
    %c0_i32_0 = arith.constant 0 : i32
    %c0_i32_1 = arith.constant 0 : i32
    return %c0_i32, %c0_i32_0 : i32, i32
  }
  func.func @transform_5(%arg0: i32) -> (i32, i32) {
    %c0_i32 = arith.constant 0 : i32
    %c0_i32_0 = arith.constant 0 : i32
    return %c0_i32, %arg0 : i32, i32
  }
}

module attributes {stable_mosaic.version = 11 : i64} {
  func.func @kernel(%arg0: i32, %arg1: memref<54x128xbf16, #tpu.memory_space<vmem>>, %arg2: memref<6x54xbf16, #tpu.memory_space<vmem>>, %arg3: memref<6x128xf32, #tpu.memory_space<vmem>>, %arg4: memref<8x6xbf16, #tpu.memory_space<vmem>>, %arg5: memref<8x128xbf16, #tpu.memory_space<vmem>>) attributes {dimension_semantics = [#tpu.dimension_semantics<parallel>], iteration_bounds = array<i64: 4>, scalar_prefetch = 0 : i64, scratch_operands = 0 : i64, tpu.core_type = #tpu.core_type<tc>, window_params = [{transform_indices = @transform_0, window_bounds = array<i64: 54, 128>}, {pipeline_mode = #tpu.pipeline_mode<synchronous>, transform_indices = @transform_1, window_bounds = array<i64: 6, 54>}, {pipeline_mode = #tpu.pipeline_mode<synchronous>, transform_indices = @transform_2, window_bounds = array<i64: 6, 128>}, {pipeline_mode = #tpu.pipeline_mode<synchronous>, transform_indices = @transform_3, window_bounds = array<i64: 8, 6>}, {transform_indices = @transform_4, window_bounds = array<i64: 8, 128>}]} {
    %c0 = arith.constant 0 : index
    %c0_0 = arith.constant 0 : index
    %0 = vector.load %arg2[%c0, %c0_0] : memref<6x54xbf16, #tpu.memory_space<vmem>>, vector<6x54xbf16>
    %c0_1 = arith.constant 0 : index
    %c0_2 = arith.constant 0 : index
    %1 = vector.load %arg1[%c0_1, %c0_2] : memref<54x128xbf16, #tpu.memory_space<vmem>>, vector<54x128xbf16>
    %cst = arith.constant dense<0.000000e+00> : vector<6x128xf32>
    %2 = tpu.matmul %0, %1, %cst {dimension_numbers = #tpu.dot_dimension_numbers<[1], [0], [0], [1], [0, 0, 1, 1], [], []>} : vector<6x54xbf16>, vector<54x128xbf16>, vector<6x128xf32> -> vector<6x128xf32>
    %c0_3 = arith.constant 0 : index
    %c0_4 = arith.constant 0 : index
    %3 = vector.load %arg3[%c0_3, %c0_4] : memref<6x128xf32, #tpu.memory_space<vmem>>, vector<6x128xf32>
    %4 = arith.addf %2, %3 : vector<6x128xf32>
    %cst_5 = arith.constant 0.000000e+00 : f32
    %5 = vector.broadcast %cst_5 : f32 to vector<6x128xf32>
    %6 = arith.maximumf %4, %5 : vector<6x128xf32>
    %c0_6 = arith.constant 0 : index
    %c0_7 = arith.constant 0 : index
    %7 = vector.load %arg4[%c0_6, %c0_7] : memref<8x6xbf16, #tpu.memory_space<vmem>>, vector<8x6xbf16>
    %8 = arith.truncf %6 : vector<6x128xf32> to vector<6x128xbf16>
    %cst_8 = arith.constant dense<0.000000e+00> : vector<8x128xf32>
    %9 = tpu.matmul %7, %8, %cst_8 {dimension_numbers = #tpu.dot_dimension_numbers<[1], [0], [0], [1], [0, 0, 1, 1], [], []>} : vector<8x6xbf16>, vector<6x128xbf16>, vector<8x128xf32> -> vector<8x128xf32>
    %10 = arith.truncf %9 : vector<8x128xf32> to vector<8x128xbf16>
    %c0_9 = arith.constant 0 : index
    %c0_10 = arith.constant 0 : index
    %11 = vector.load %arg5[%c0_9, %c0_10] : memref<8x128xbf16, #tpu.memory_space<vmem>>, vector<8x128xbf16>
    tpu.vector_store %arg5[%c0_9, %c0_10], %10 {strides = array<i32>} : memref<8x128xbf16, #tpu.memory_space<vmem>>, vector<8x128xbf16>,
    return
  }
  func.func @transform_0(%arg0: i32) -> (i32, i32) {
    %c0_i32 = arith.constant 0 : i32
    %c0_i32_0 = arith.constant 0 : i32
    return %c0_i32, %arg0 : i32, i32
  }
  func.func @transform_1(%arg0: i32) -> (i32, i32) {
    %c0_i32 = arith.constant 0 : i32
    %c0_i32_0 = arith.constant 0 : i32
    %c0_i32_1 = arith.constant 0 : i32
    return %c0_i32, %c0_i32_0 : i32, i32
  }
  func.func @transform_2(%arg0: i32) -> (i32, i32) {
    %c0_i32 = arith.constant 0 : i32
    %c0_i32_0 = arith.constant 0 : i32
    %c0_i32_1 = arith.constant 0 : i32
    return %c0_i32, %c0_i32_0 : i32, i32
  }
  func.func @transform_3(%arg0: i32) -> (i32, i32) {
    %c0_i32 = arith.constant 0 : i32
    %c0_i32_0 = arith.constant 0 : i32
    %c0_i32_1 = arith.constant 0 : i32
    return %c0_i32, %c0_i32_0 : i32, i32
  }
  func.func @transform_4(%arg0: i32) -> (i32, i32) {
    %c0_i32 = arith.constant 0 : i32
    %c0_i32_0 = arith.constant 0 : i32
    return %c0_i32, %arg0 : i32, i32
  }
}

module attributes {stable_mosaic.version = 11 : i64} {
  func.func @kernel(%arg0: i32, %arg1: memref<8x512xbf16, #tpu.memory_space<vmem>>, %arg2: memref<16x512xbf16, #tpu.memory_space<vmem>>, %arg3: memref<8x8xbf16, #tpu.memory_space<vmem>>, %arg4: memref<8x16xbf16, #tpu.memory_space<vmem>>, %arg5: memref<8x512xf32, #tpu.memory_space<vmem>>, %arg6: memref<8x512xbf16, #tpu.memory_space<vmem>>, %arg7: memref<8x512xf32, #tpu.memory_space<vmem>>) attributes {dimension_semantics = [#tpu.dimension_semantics<parallel>], iteration_bounds = array<i64: 4>, scalar_prefetch = 0 : i64, scratch_operands = 0 : i64, tpu.core_type = #tpu.core_type<tc>, window_params = [{transform_indices = @transform_0, window_bounds = array<i64: 8, 512>}, {transform_indices = @transform_1, window_bounds = array<i64: 16, 512>}, {pipeline_mode = #tpu.pipeline_mode<synchronous>, transform_indices = @transform_2, window_bounds = array<i64: 8, 8>}, {pipeline_mode = #tpu.pipeline_mode<synchronous>, transform_indices = @transform_3, window_bounds = array<i64: 8, 16>}, {pipeline_mode = #tpu.pipeline_mode<synchronous>, transform_indices = @transform_4, window_bounds = array<i64: 8, 512>}, {transform_indices = @transform_5, window_bounds = array<i64: 8, 512>}, {transform_indices = @transform_6, window_bounds = array<i64: 8, 512>}]} {
    %c0 = arith.constant 0 : index
    %c0_0 = arith.constant 0 : index
    %0 = vector.load %arg3[%c0, %c0_0] : memref<8x8xbf16, #tpu.memory_space<vmem>>, vector<8x8xbf16>
    %c0_1 = arith.constant 0 : index
    %c0_2 = arith.constant 0 : index
    %1 = vector.load %arg1[%c0_1, %c0_2] : memref<8x512xbf16, #tpu.memory_space<vmem>>, vector<8x512xbf16>
    %cst = arith.constant dense<0.000000e+00> : vector<8x512xf32>
    %2 = tpu.matmul %0, %1, %cst {dimension_numbers = #tpu.dot_dimension_numbers<[1], [0], [0], [1], [0, 0, 1, 1], [], []>} : vector<8x8xbf16>, vector<8x512xbf16>, vector<8x512xf32> -> vector<8x512xf32>
    %c0_3 = arith.constant 0 : index
    %c0_4 = arith.constant 0 : index
    %3 = vector.load %arg4[%c0_3, %c0_4] : memref<8x16xbf16, #tpu.memory_space<vmem>>, vector<8x16xbf16>
    %c0_5 = arith.constant 0 : index
    %c0_6 = arith.constant 0 : index
    %4 = vector.load %arg2[%c0_5, %c0_6] : memref<16x512xbf16, #tpu.memory_space<vmem>>, vector<16x512xbf16>
    %cst_7 = arith.constant dense<0.000000e+00> : vector<8x512xf32>
    %5 = tpu.matmul %3, %4, %cst_7 {dimension_numbers = #tpu.dot_dimension_numbers<[1], [0], [0], [1], [0, 0, 1, 1], [], []>} : vector<8x16xbf16>, vector<16x512xbf16>, vector<8x512xf32> -> vector<8x512xf32>
    %6 = arith.addf %2, %5 : vector<8x512xf32>
    %c0_8 = arith.constant 0 : index
    %c0_9 = arith.constant 0 : index
    %7 = vector.load %arg5[%c0_8, %c0_9] : memref<8x512xf32, #tpu.memory_space<vmem>>, vector<8x512xf32>
    %8 = arith.addf %6, %7 : vector<8x512xf32>
    %c0_10 = arith.constant 0 : index
    %c0_11 = arith.constant 0 : index
    %9 = vector.load %arg6[%c0_10, %c0_11] : memref<8x512xbf16, #tpu.memory_space<vmem>>, vector<8x512xbf16>
    %10 = arith.extf %9 : vector<8x512xbf16> to vector<8x512xf32>
    %11 = arith.addf %8, %10 : vector<8x512xf32>
    %cst_12 = arith.constant 0.000000e+00 : f32
    %12 = vector.broadcast %cst_12 : f32 to vector<8x512xf32>
    %13 = arith.maximumf %11, %12 : vector<8x512xf32>
    %c0_13 = arith.constant 0 : index
    %c0_14 = arith.constant 0 : index
    %14 = vector.load %arg7[%c0_13, %c0_14] : memref<8x512xf32, #tpu.memory_space<vmem>>, vector<8x512xf32>
    tpu.vector_store %arg7[%c0_13, %c0_14], %13 {strides = array<i32>} : memref<8x512xf32, #tpu.memory_space<vmem>>, vector<8x512xf32>,
    return
  }
  func.func @transform_0(%arg0: i32) -> (i32, i32) {
    %c0_i32 = arith.constant 0 : i32
    %c0_i32_0 = arith.constant 0 : i32
    return %c0_i32, %arg0 : i32, i32
  }
  func.func @transform_1(%arg0: i32) -> (i32, i32) {
    %c0_i32 = arith.constant 0 : i32
    %c0_i32_0 = arith.constant 0 : i32
    return %c0_i32, %arg0 : i32, i32
  }
  func.func @transform_2(%arg0: i32) -> (i32, i32) {
    %c0_i32 = arith.constant 0 : i32
    %c0_i32_0 = arith.constant 0 : i32
    %c0_i32_1 = arith.constant 0 : i32
    return %c0_i32, %c0_i32_0 : i32, i32
  }
  func.func @transform_3(%arg0: i32) -> (i32, i32) {
    %c0_i32 = arith.constant 0 : i32
    %c0_i32_0 = arith.constant 0 : i32
    %c0_i32_1 = arith.constant 0 : i32
    return %c0_i32, %c0_i32_0 : i32, i32
  }
  func.func @transform_4(%arg0: i32) -> (i32, i32) {
    %c0_i32 = arith.constant 0 : i32
    %c0_i32_0 = arith.constant 0 : i32
    %c0_i32_1 = arith.constant 0 : i32
    return %c0_i32, %c0_i32_0 : i32, i32
  }
  func.func @transform_5(%arg0: i32) -> (i32, i32) {
    %c0_i32 = arith.constant 0 : i32
    %c0_i32_0 = arith.constant 0 : i32
    return %c0_i32, %arg0 : i32, i32
  }
  func.func @transform_6(%arg0: i32) -> (i32, i32) {
    %c0_i32 = arith.constant 0 : i32
    %c0_i32_0 = arith.constant 0 : i32
    return %c0_i32, %arg0 : i32, i32
  }
}

</mosaic_0001>

<bundles_post_ra>
// kernel: _lambda_.4
= control target key start
LH: loop header
LB: loop body
LE: loop exit
PB: predicated region body
PF: predicated region fallthrough
CT: control target
= control target key end

     0   :  { %s795_s21 = smov 0   ;;  %s797_s22 = smov 0   ;;  %s887_s0 = inlined_call_operand.vmem [shape: bf16[16,512], index: 0, kind: input, shape index: {}]   ;;  %s888_s1 = inlined_call_operand.vmem [shape: bf16[32,512], index: 1, kind: input, shape index: {}]   ;;  %s889_s2 = inlined_call_operand.vmem [shape: bf16[16,16], index: 2, kind: input, shape index: {}]   ;;  %s890_s3 = inlined_call_operand.vmem [shape: bf16[16,32], index: 3, kind: input, shape index: {}]   ;;  %s891_s4 = inlined_call_operand.vmem [shape: f32[16,128], index: 4, kind: input, shape index: {}]   ;;  %s892_s5 = inlined_call_operand.vmem [shape: bf16[16,512], index: 5, kind: input, shape index: {}]   ;;  %s893_s6 = inlined_call_operand.vmem [shape: f32[16,512], index: 6, kind: output, shape index: {}]  }
   0x1   :  { %s799_s23 = smov 0  }
   0x2 LB: > { %s662_s24 = sadd.s32 4294967295, %s758_s23   ;;  %s812_s25 = sadd.s32 1, %s758_s23   ;;  %s758_s23 = sphi %s799_s23, %s898_s23   ;;  %s754_s22 = sphi %s797_s22, %s897_s22   ;;  %s750_s21 = sphi %s795_s21, %s896_s21  }
   0x3   : > { %s20_s26 = ssub.s32 %s758_s23, %s812_s25  ;;  %s23_s27 = sadd.s32 1, %s754_s22 }
   0x4   : > { %p21_p0 = scmp.eq.s32.totalorder %s20_s26, 0  ;;  %p30_p1 = scmp.ne.s32.totalorder %s754_s22, %s750_s21 }
   0x5   : > { %p31_p2 = scmp.eq.s32.totalorder %s758_s23, 0  ;;  %p175_p3 = scmp.eq.s32.totalorder %s662_s24, 3 }
   0x6   : > { %s823_s28 = scalar_select %p21_p0, %s754_s22, %s23_s27  }
   0x7   : > { %p825_p4 = por %p31_p2, %p30_p1  ;;  %p829_p5 = por %p175_p3, %p30_p1 }
   0x8   : > { %p665_p6 = scmp.ge.s32.totalorder %s758_s23, 4 }
   0xa   : > { %206 = sbr.rel (%p665_p6) target bundleno = 35 (0x23), region = 28 }
   0xf   : > { %209 = sbr.rel (!%p825_p4) target bundleno = 21 (0x15), region = 32  ;;  %s211_s7 = sand.u32 (%p825_p4), 1, %s754_s22  }
  0x10   : > { %s667_s8 = sshll.u32 (%p825_p4), %s758_s23, 2  ;;  %s666_s9 = sshll.u32 (%p825_p4), %s211_s7, 3 }
  0x11   : > { %s215_s12 = scalar_lea.vmem (%p825_p4), %s887_s0, %s667_s8  ;;  %s213_s13 = scalar_lea.vmem (%p825_p4), [#allocation2], %s666_s9 }
  0x12   : > { %v232_v0 = vld [vmem:[%s215_s12] sm:$0xf] (%p825_p4)  ;;  %v234_v1 = vld [vmem:[%s215_s12 + $0x10] sm:$0xf] (%p825_p4) }
  0x13   : > { %233 = vst [vmem:[%s213_s13] sm:$0xf] (%p825_p4), %v232_v0 }
  0x14   : > { %235 = vst [vmem:[%s213_s13 + $0x4] sm:$0xf] %v234_v1 }
  0x15 PF: > { %263 = sbr.rel (!%p825_p4) target bundleno = 29 (0x1d), region = 73  ;;  %s265_s14 = sand.u32 (%p825_p4), 1, %s754_s22  }
  0x16   : > { %s669_s15 = sshll.u32 (%p825_p4), %s758_s23, 2  ;;  %s668_s16 = sshll.u32 (%p825_p4), %s265_s14, 4 }
  0x17   : > { %s269_s19 = scalar_lea.vmem (%p825_p4), %s888_s1, %s669_s15  ;;  %s267_s20 = scalar_lea.vmem (%p825_p4), [#allocation3], %s668_s16 }
  0x18   : > { %v286_v2 = vld [vmem:[%s269_s19] sm:$0xf] (%p825_p4)  ;;  %v288_v3 = vld [vmem:[%s269_s19 + $0x10] sm:$0xf] (%p825_p4) }
  0x19   : > { %287 = vst [vmem:[%s267_s20] sm:$0xf] (%p825_p4), %v286_v2  ;;  %v290_v4 = vld [vmem:[%s269_s19 + $0x20] sm:$0xf] (%p825_p4)  ;;  %v292_v5 = vld [vmem:[%s269_s19 + $0x30] sm:$0xf] (%p825_p4) }
  0x1a   : > { %289 = vst [vmem:[%s267_s20 + $0x4] sm:$0xf] %v288_v3 }
  0x1b   : > { %291 = vst [vmem:[%s267_s20 + $0x8] sm:$0xf] %v290_v4 }
  0x1c   : > { %293 = vst [vmem:[%s267_s20 + $0xc] sm:$0xf] %v292_v5 }
  0x1d PF: > { %325 = sbr.rel (!%p825_p4) target bundleno = 35 (0x23), region = 114  ;;  %s327_s26 = sand.u32 (%p825_p4), 1, %s754_s22  }
  0x1e   : > { %s671_s27 = sshll.u32 (%p825_p4), %s758_s23, 2  ;;  %s670_s7 = sshll.u32 (%p825_p4), %s327_s26, 3 }
  0x1f   : > { %s331_s10 = scalar_lea.vmem (%p825_p4), %s892_s5, %s671_s27  ;;  %s329_s11 = scalar_lea.vmem (%p825_p4), [#allocation4], %s670_s7 }
  0x20   : > { %v348_v6 = vld [vmem:[%s331_s10] sm:$0xf] (%p825_p4)  ;;  %v350_v7 = vld [vmem:[%s331_s10 + $0x10] sm:$0xf] (%p825_p4) }
  0x21   : > { %349 = vst [vmem:[%s329_s11] sm:$0xf] (%p825_p4), %v348_v6 }
  0x22   : > { %351 = vst [vmem:[%s329_s11 + $0x4] sm:$0xf] %v350_v7 }
  0x23 PF: > { %p672_p7 = scmp.ge.s32.totalorder %s758_s23, 1  ;;  %p378_p8 = scmp.lt.s32.totalorder %s758_s23, 5 }
  0x25   : > { %p379_p9 = pnand %p672_p7, %p378_p8 }
  0x26   : > { %s385_s29 = sand.u32 (!%p379_p9), 1, %s750_s21  }
  0x27   : > { %382 = sbr.rel (%p379_p9) target bundleno = 203 (0xcb), region = 155  ;;  %s674_s12 = sshll.u32 (!%p379_p9), %s385_s29, 4 }
  0x28   : > { %s673_s13 = sshll.u32 (!%p379_p9), %s385_s29, 3  ;;  %s394_s14 = scalar_lea.vmem (!%p379_p9), [#allocation3], %s674_s12 }
  0x29   : > { %s387_s15 = scalar_lea.vmem (!%p379_p9), [#allocation2], %s673_s13  ;;  %s401_s21 = scalar_lea.vmem (!%p379_p9), [#allocation4], %s673_s13 }
  0x2a   : > { %s434_s8 = scalar_lea.vmem (!%p379_p9), [#allocation5], %s674_s12 }
  0x2c   : > { %v707_v8 = vld [vmem:[%s394_s14 + $0x8] sm:$0xff]  ;;  %v703_v10 = vld [vmem:[%s889_s2] sm:$0xff]  ;;  %vm492_vm0 = vcmask 130048   ;;  %vm463_vm1 = vcmask 261120   ;;  %v709_v13 = vld [vmem:[%s401_s21] sm:$0xff]   ;;  %s700_s9 = sshll.u32 (%p829_p5), %s662_s24, 3 }
  0x2d   : > { %v704_v9 = vld [vmem:[%s387_s15] sm:$0xff]  ;;  %473 = vmatpush.bf16.msra.mxu0 %v707_v8  ;;  %v706_v11 = vld [vmem:[%s394_s14] sm:$0xff]  ;;  %v710_v17 = vunpack.c.l.bf16 %v709_v13  ;;  %v711_v25 = vunpack.c.h.bf16 %v709_v13  ;;  %s532_s29 = scalar_lea.vmem (%p829_p5), %s893_s6, %s700_s9 }
  0x2e   : > { %503 = vmatpush.bf16.msra.mxu1 %v704_v9  ;;  %v705_v12 = vld [vmem:[%s890_s3] sm:$0xff]  ;;  %v511_v24 = vld [vmem:[%s891_s4 + $0x8] sm:$0xff] }
  0x2f   : > { %v510_v16 = vld [vmem:[%s891_s4] sm:$0xff] }
  0x31   : > { %698 = vmatmul.msk.bf16.vlgmr.msra.gmra.mxu1 %vm492_vm0, %v703_v10  ;;  %474 = vmatpush.bf16.msra.mxu0 %v706_v11 }
  0x34   : > { %689 = vmatmul.msk.bf16.vlgmr.msra.gmra.mxu0 %vm463_vm1, %v705_v12 }
  0xae   : > { %v505_v14 = vpop.f32.mrf.mxu1 }
  0xb1   : > { %v476_v15 = vpop.f32.mrf.mxu0 }
  0xb2   : > { %v506_v18 = vadd.f32 %v505_v14, %v476_v15 }
  0xb4   : > { %v512_v19 = vadd.f32 %v510_v16, %v506_v18 }
  0xb6   : > { %v518_v20 = vadd.f32 %v710_v17, %v512_v19  ;;  %v507_v22 = vpop.f32.mrf.mxu1 }
  0xb8   : > { %v520_v21 = vmax.f32 %v518_v20, 0.0 }
  0xb9   : > { %v478_v23 = vpop.f32.mrf.mxu0 }
  0xba   : > { %522 = vst [vmem:[%s434_s8] sm:$0xff] %v520_v21  ;;  %v508_v26 = vadd.f32 %v507_v22, %v478_v23 }
  0xbc   : > { %v513_v27 = vadd.f32 %v511_v24, %v508_v26 }
  0xbe   : > { %v519_v28 = vadd.f32 %v711_v25, %v513_v27  ;;  %530 = sbr.rel (!%p829_p5) target bundleno = 203 (0xcb), region = 171 }
  0xc0   : > { %v521_v29 = vmax.f32 %v519_v28, 0.0 }
  0xc1   : > { %v563_v30 = vld [vmem:[%s434_s8] sm:$0xff] (%p829_p5) }
  0xc2   : > { %523 = vst [vmem:[%s434_s8 + $0x8] sm:$0xff] %v521_v29 }
  0xc3   : > { %564 = vst [vmem:[%s532_s29] sm:$0xff] %v563_v30 }
  0xc9   : > { %v565_v31 = vld [vmem:[%s434_s8 + $0x8] sm:$0xff] }
  0xca   : > { %566 = vst [vmem:[%s532_s29 + $0x20] sm:$0xff] %v565_v31 }
  0xcb PF: > { %p13_p10 = scmp.ge.s32.totalorder %s812_s25, 6   ;;  %s896_s21 = smov %s754_s22 }
  0xcc   : > { %s897_s22 = smov %s823_s28  ;;  %s898_s23 = smov %s812_s25 }
  0xcd   :  { %15 = sbr.rel (!%p13_p10) target bundleno = 2 (0x2), region = 256 }

// kernel: _lambda_.5
= control target key start
LH: loop header
LB: loop body
LE: loop exit
PB: predicated region body
PF: predicated region fallthrough
CT: control target
= control target key end

     0   :  { %s510_s18 = smov 0   ;;  %s512_s19 = smov 0   ;;  %s576_s0 = inlined_call_operand.vmem [shape: bf16[8,512], index: 0, kind: input, shape index: {}]   ;;  %s577_s1 = inlined_call_operand.vmem [shape: bf16[16,512], index: 1, kind: input, shape index: {}]   ;;  %s578_s2 = inlined_call_operand.vmem [shape: bf16[6,8], index: 2, kind: input, shape index: {}]   ;;  %s579_s3 = inlined_call_operand.vmem [shape: bf16[6,16], index: 3, kind: input, shape index: {}]   ;;  %s580_s4 = inlined_call_operand.vmem [shape: f32[6,128], index: 4, kind: input, shape index: {}]   ;;  %s581_s5 = inlined_call_operand.vmem [shape: bf16[6,512], index: 5, kind: output, shape index: {}]  }
   0x1   :  { %s514_s20 = smov 0  }
   0x2 LB: > { %s413_s21 = sadd.s32 4294967295, %s478_s20   ;;  %s527_s22 = sadd.s32 1, %s478_s20   ;;  %s478_s20 = sphi %s514_s20, %s584_s20   ;;  %s474_s19 = sphi %s512_s19, %s583_s19   ;;  %s470_s18 = sphi %s510_s18, %s582_s18  }
   0x3   : > { %s45_s23 = ssub.s32 %s478_s20, %s527_s22  ;;  %s48_s24 = sadd.s32 1, %s474_s19 }
   0x4   : > { %p46_p0 = scmp.eq.s32.totalorder %s45_s23, 0  ;;  %p55_p1 = scmp.ne.s32.totalorder %s474_s19, %s470_s18 }
   0x5   : > { %p56_p2 = scmp.eq.s32.totalorder %s478_s20, 0  ;;  %p416_p4 = scmp.ge.s32.totalorder %s478_s20, 4 }
   0x6   : > { %s536_s25 = scalar_select %p46_p0, %s474_s19, %s48_s24  }
   0x7   : > { %p57_p3 = por %p56_p2, %p55_p1  ;;  %179 = sbr.rel (%p416_p4) target bundleno = 18 (0x12), region = 28 }
   0xc   : > { %189 = sbr.rel (!%p57_p3) target bundleno = 18 (0x12), region = 36  ;;  %s191_s26 = sand.u32 (%p57_p3), 1, %s474_s19  }
   0xd   : > { %s418_s27 = sshll.u32 (%p57_p3), %s478_s20, 2  ;;  %s417_s28 = sshll.u32 (%p57_p3), %s191_s26, 3 }
   0xe   : > { %s195_s6 = scalar_lea.vmem (%p57_p3), %s577_s1, %s418_s27  ;;  %s193_s7 = scalar_lea.vmem (%p57_p3), [#allocation2], %s417_s28 }
   0xf   : > { %v212_v0 = vld [vmem:[%s195_s6] sm:$0xf] (%p57_p3)  ;;  %v214_v1 = vld [vmem:[%s195_s6 + $0x10] sm:$0xf] (%p57_p3) }
  0x10   : > { %213 = vst [vmem:[%s193_s7] sm:$0xf] (%p57_p3), %v212_v0 }
  0x11   : > { %215 = vst [vmem:[%s193_s7 + $0x4] sm:$0xf] %v214_v1 }
  0x12 PF: > { %p419_p5 = scmp.ge.s32.totalorder %s478_s20, 1  ;;  %p242_p6 = scmp.lt.s32.totalorder %s478_s20, 5 }
  0x14   : > { %p243_p7 = pnand %p419_p5, %p242_p6 }
  0x15   : > { %s249_s8 = sand.u32 (!%p243_p7), 1, %s470_s18   ;;  %p279_p8 = scmp.lt.s32.totalorder (!%p243_p7), %s413_s21, 3 }
  0x16   : > { %246 = sbr.rel (%p243_p7) target bundleno = 170 (0xaa), region = 77  ;;  %s420_s9 = sshll.u32 (!%p243_p7), %s249_s8, 3 }
  0x17   : > { %s251_s10 = scalar_lea.vmem (!%p243_p7), [#allocation2], %s420_s9 }
  0x1b   : > { %v431_v2 = vld [vmem:[%s251_s10] sm:$0xff]  ;;  %s586_s21 = smov (!%p279_p8, %s413_s21), 3  ;;  %vm320_vm0 = vcmask 1043456   ;;  %vm299_vm1 = vcmask 130048   ;;  %vm316_vm2 = vcmask 64512  }
  0x1c   : > { %310 = vmatpush.bf16.msra.mxu0 %v431_v2  ;;  %s421_s11 = sshll.u32 %s586_s21, 2  ;;  %v290_v3 = vld [vmem:[%s579_s3] sm:$0x7] }
  0x1d   : > { %s282_s16 = scalar_lea.vmem %s576_s0, %s421_s11  ;;  %v288_v6 = vld [vmem:[%s578_s2] sm:$0x7]  ;;  %s286_s26 = scalar_lea.vmem %s581_s5, %s421_s11 }
  0x1e   : > { %v289_v4 = vld [vmem:[%s282_s16] sm:$0xf] }
  0x1f   : > { %v322_v5 = vsel %vm320_vm0, %v289_v4, 0  ;;  %427 = vmatmul.msk.bf16.vlgmr.msra.gmra.mxu0 %vm299_vm1, %v290_v3  ;;  %v337_v9 = vld [vmem:[%s580_s4] sm:$0x3f] }
  0x20   : > { %331 = vmatpush.bf16.msra.mxu1 %v322_v5 }
  0x23   : > { %428 = vmatmul.msk.bf16.vlgmr.msra.gmra.mxu1 %vm316_vm2, %v288_v6 }
  0x9c   : > { %v312_v7 = vpop.f32.mrf.mxu0 }
  0xa0   : > { %v333_v8 = vpop.f32.mrf.mxu1 }
  0xa1   : > { %v334_v10 = vadd.f32 %v333_v8, %v312_v7 }
  0xa3   : > { %v338_v11 = vadd.f32 %v337_v9, %v334_v10 }
  0xa4   : > { %v314_v12 = vpop.f32.mrf.mxu0 }
  0xa5   : > { %v339_v13 = vmax.f32 %v338_v11, 0.0 }
  0xa7   : > { %v340_v14 = vpack.c.bf16 %v339_v13, %v339_v13 }
  0xa8   : > { %v335_v15 = vpop.f32.mrf.mxu1 }
  0xa9   : > { %341 = vst [vmem:[%s286_s26] sm:$0x7] %v340_v14 }
  0xaa PF: > { %p12_p9 = scmp.ge.s32.totalorder %s527_s22, 6   ;;  %s582_s18 = smov %s474_s19 }
  0xab   : > { %s583_s19 = smov %s536_s25  ;;  %s584_s20 = smov %s527_s22 }
  0xac   :  { %14 = sbr.rel (!%p12_p9) target bundleno = 2 (0x2), region = 119 }

// kernel: _lambda_.6
= control target key start
LH: loop header
LB: loop body
LE: loop exit
PB: predicated region body
PF: predicated region fallthrough
CT: control target
= control target key end

     0   :  { %s500_s15 = smov 0   ;;  %s502_s16 = smov 0   ;;  %s565_s0 = inlined_call_operand.vmem [shape: bf16[54,512], index: 0, kind: input, shape index: {}]   ;;  %s566_s1 = inlined_call_operand.vmem [shape: bf16[6,54], index: 1, kind: input, shape index: {}]   ;;  %s567_s2 = inlined_call_operand.vmem [shape: f32[6,128], index: 2, kind: input, shape index: {}]   ;;  %s568_s3 = inlined_call_operand.vmem [shape: bf16[8,6], index: 3, kind: input, shape index: {}]   ;;  %s569_s4 = inlined_call_operand.vmem [shape: bf16[8,512], index: 4, kind: output, shape index: {}]  }
   0x1   :  { %s504_s17 = smov 0  }
   0x2 LB: > { %s399_s18 = sadd.s32 4294967295, %s473_s17   ;;  %s517_s19 = sadd.s32 1, %s473_s17   ;;  %s473_s17 = sphi %s504_s17, %s572_s17   ;;  %s469_s16 = sphi %s502_s16, %s571_s16   ;;  %s465_s15 = sphi %s500_s15, %s570_s15  }
   0x3   : > { %s18_s20 = ssub.s32 %s473_s17, %s517_s19  ;;  %s21_s21 = sadd.s32 1, %s469_s16 }
   0x4   : > { %p19_p0 = scmp.eq.s32.totalorder %s18_s20, 0  ;;  %p28_p1 = scmp.ne.s32.totalorder %s469_s16, %s465_s15 }
   0x5   : > { %p29_p2 = scmp.eq.s32.totalorder %s473_s17, 0  ;;  %p402_p4 = scmp.ge.s32.totalorder %s473_s17, 4 }
   0x6   : > { %s526_s22 = scalar_select %p19_p0, %s469_s16, %s21_s21  }
   0x7   : > { %p30_p3 = por %p29_p2, %p28_p1  ;;  %152 = sbr.rel (%p402_p4) target bundleno = 23 (0x17), region = 28 }
   0xc   : > { %155 = sbr.rel (!%p30_p3) target bundleno = 23 (0x17), region = 32  ;;  %s157_s23 = sand.u32 (%p30_p3), 1, %s469_s16  }
   0xd   : > { %s403_s24 = sshll.u32 (%p30_p3), %s473_s17, 2  ;;  %s425_s25 = smul.u32 (%p30_p3), 28, %s157_s23 }
   0xe   : > { %s161_s28 = scalar_lea.vmem (%p30_p3), %s565_s0, %s403_s24 }
   0xf   : > { %v178_v0 = vld [vmem:[%s161_s28] sm:$0xf] (%p30_p3)  ;;  %v180_v1 = vld [vmem:[%s161_s28 + $0x10] sm:$0xf] (%p30_p3)  ;;  %s159_s29 = scalar_lea.vmem (%p30_p3), [#allocation2], %s425_s25 }
  0x10   : > { %v182_v2 = vld [vmem:[%s161_s28 + $0x20] sm:$0xf] (%p30_p3)  ;;  %179 = vst [vmem:[%s159_s29] sm:$0xf] (%p30_p3), %v178_v0  ;;  %v184_v3 = vld [vmem:[%s161_s28 + $0x30] sm:$0xf] (%p30_p3) }
  0x11   : > { %181 = vst [vmem:[%s159_s29 + $0x4] sm:$0xf] %v180_v1  ;;  %v186_v4 = vld [vmem:[%s161_s28 + $0x40] sm:$0xf]  ;;  %v188_v5 = vld [vmem:[%s161_s28 + $0x50] sm:$0xf] }
  0x12   : > { %183 = vst [vmem:[%s159_s29 + $0x8] sm:$0xf] %v182_v2  ;;  %v190_v6 = vld [vmem:[%s161_s28 + $0x60] sm:$0xf] }
  0x13   : > { %185 = vst [vmem:[%s159_s29 + $0xc] sm:$0xf] %v184_v3 }
  0x14   : > { %187 = vst [vmem:[%s159_s29 + $0x10] sm:$0xf] %v186_v4 }
  0x15   : > { %189 = vst [vmem:[%s159_s29 + $0x14] sm:$0xf] %v188_v5 }
  0x16   : > { %191 = vst [vmem:[%s159_s29 + $0x18] sm:$0xf] %v190_v6 }
  0x17 PF: > { %p404_p5 = scmp.ge.s32.totalorder %s473_s17, 1  ;;  %p228_p6 = scmp.lt.s32.totalorder %s473_s17, 5 }
  0x19   : > { %p229_p7 = pnand %p404_p5, %p228_p6 }
  0x1a   : > { %s235_s30 = sand.u32 (!%p229_p7), 1, %s465_s15   ;;  %p259_p8 = scmp.lt.s32.totalorder (!%p229_p7), %s399_s18, 3 }
  0x1b   : > { %232 = sbr.rel (%p229_p7) target bundleno = 323 (0x143), region = 73 }
  0x1c   : > { %s426_s5 = smul.u32 (!%p229_p7), 28, %s235_s30 }
  0x1e   : > { %s237_s6 = scalar_lea.vmem (!%p229_p7), [#allocation2], %s426_s5 }
  0x20   : > { %v271_v7 = vld [vmem:[%s237_s6 + $0x18] sm:$0x7]  ;;  %vm298_vm0 = vcmask 1042432   ;;  %v424_v11 = vld [vmem:[%s237_s6 + $0x10] sm:$0xff]  ;;  %v423_v12 = vld [vmem:[%s237_s6 + $0x8] sm:$0xff]  ;;  %vm294_vm1 = vcmask 441344  }
  0x21   : > { %v286_v8 = vunpack.c.l.b16 %v271_v7  ;;  %v422_v13 = vld [vmem:[%s237_s6] sm:$0xff]  ;;  %vm318_vm2 = vcmask 48128   ;;  %s574_s18 = smov (!%p259_p8, %s399_s18), 3 }
  0x22   : > { %v264_v14 = vld [vmem:[%s566_s1] sm:$0x7]  ;;  %s405_s13 = sshll.u32 %s574_s18, 2 }
  0x23   : > { %v290_v9 = vpack.c.b16 %v286_v8, %v286_v8  ;;  %v272_v15 = vld [vmem:[%s567_s2] sm:$0x3f]  ;;  %s262_s20 = scalar_lea.vmem %s569_s4, %s405_s13 }
  0x24   : > { %v316_v22 = vld [vmem:[%s568_s3] sm:$0xf] }
  0x25   : > { %v300_v10 = vsel %vm298_vm0, %v290_v9, 0 }
  0x26   : > { %306 = vmatpush.bf16.msra.mxu0 %v300_v10 }
  0x2a   : > { %307 = vmatpush.bf16.msra.mxu0 %v424_v11 }
  0x2e   : > { %308 = vmatpush.bf16.msra.mxu0 %v423_v12 }
  0x32   : > { %309 = vmatpush.bf16.msra.mxu0 %v422_v13 }
  0x35   : > { %418 = vmatmul.msk.bf16.vlgmr.msra.gmra.mxu0 %vm294_vm1, %v264_v14 }
  0xb2   : > { %v311_v16 = vpop.f32.mrf.mxu0 }
  0xb3   : > { %v312_v17 = vadd.f32 %v311_v16, %v272_v15 }
  0xb5   : > { %v315_v18 = vmax.f32 %v312_v17, 0.0 }
  0xb7   : > { %v317_v19 = vpack.c.bf16 %v315_v18, %v315_v18 }
  0xb9   : > { %v323_v20 = vsel %vm298_vm0, %v317_v19, 0 }
  0xba   : > { %v313_v21 = vpop.f32.mrf.mxu0  ;;  %332 = vmatpush.bf16.msra.mxu1 %v323_v20 }
  0xbd   : > { %419 = vmatmul.msk.bf16.vlgmr.msra.gmra.mxu1 %vm318_vm2, %v316_v22 }
 0x13a   : > { %v334_v23 = vpop.f32.mrf.mxu1 }
 0x13b   : > { %v338_v24 = vpack.c.bf16 %v334_v23, %v334_v23 }
 0x13d   : > { %339 = vst [vmem:[%s262_s20] sm:$0xf] %v338_v24 }
 0x142   : > { %v336_v25 = vpop.f32.mrf.mxu1 }
 0x143 PF: > { %p11_p9 = scmp.ge.s32.totalorder %s517_s19, 6   ;;  %s570_s15 = smov %s469_s16 }
 0x144   : > { %s571_s16 = smov %s526_s22  ;;  %s572_s17 = smov %s517_s19 }
 0x145   :  { %13 = sbr.rel (!%p11_p9) target bundleno = 2 (0x2), region = 112 }

// kernel: _lambda_.7
= control target key start
LH: loop header
LB: loop body
LE: loop exit
PB: predicated region body
PF: predicated region fallthrough
CT: control target
= control target key end

     0   :  { %s729_s21 = smov 0   ;;  %s731_s22 = smov 0   ;;  %s813_s0 = inlined_call_operand.vmem [shape: bf16[8,2048], index: 0, kind: input, shape index: {}]   ;;  %s814_s1 = inlined_call_operand.vmem [shape: bf16[16,2048], index: 1, kind: input, shape index: {}]   ;;  %s815_s2 = inlined_call_operand.vmem [shape: bf16[8,8], index: 2, kind: input, shape index: {}]   ;;  %s816_s3 = inlined_call_operand.vmem [shape: bf16[8,16], index: 3, kind: input, shape index: {}]   ;;  %s817_s4 = inlined_call_operand.vmem [shape: f32[8,512], index: 4, kind: input, shape index: {}]   ;;  %s818_s5 = inlined_call_operand.vmem [shape: bf16[8,2048], index: 5, kind: input, shape index: {}]   ;;  %s819_s6 = inlined_call_operand.vmem [shape: f32[8,2048], index: 6, kind: output, shape index: {}]  }
   0x1   :  { %s733_s23 = smov 0  }
   0x2 LB: > { %s600_s24 = sadd.s32 4294967295, %s692_s23   ;;  %s746_s25 = sadd.s32 1, %s692_s23   ;;  %s692_s23 = sphi %s733_s23, %s822_s23   ;;  %s688_s22 = sphi %s731_s22, %s821_s22   ;;  %s684_s21 = sphi %s729_s21, %s820_s21  }
   0x3   : > { %s46_s26 = ssub.s32 %s692_s23, %s746_s25  ;;  %s49_s27 = sadd.s32 1, %s688_s22 }
   0x4   : > { %p47_p0 = scmp.eq.s32.totalorder %s46_s26, 0  ;;  %p56_p1 = scmp.ne.s32.totalorder %s688_s22, %s684_s21 }
   0x5   : > { %p57_p2 = scmp.eq.s32.totalorder %s692_s23, 0  ;;  %p603_p4 = scmp.ge.s32.totalorder %s692_s23, 4 }
   0x6   : > { %s755_s28 = scalar_select %p47_p0, %s688_s22, %s49_s27  }
   0x7   : > { %p58_p3 = por %p57_p2, %p56_p1  ;;  %206 = sbr.rel (%p603_p4) target bundleno = 20 (0x14), region = 28 }
   0xc   : > { %218 = sbr.rel (!%p58_p3) target bundleno = 20 (0x14), region = 36  ;;  %s220_s29 = sand.u32 (%p58_p3), 1, %s688_s22  }
   0xd   : > { %s641_s30 = sshll.u32 (%p58_p3), %s692_s23, 4  ;;  %s604_s7 = sshll.u32 (%p58_p3), %s220_s29, 5 }
   0xe   : > { %s225_s10 = scalar_lea.vmem (%p58_p3), %s814_s1, %s641_s30  ;;  %s222_s11 = scalar_lea.vmem (%p58_p3), [#allocation2], %s604_s7 }
   0xf   : > { %v238_v0 = vld [vmem:[%s225_s10] sm:$0xff] (%p58_p3)  ;;  %v240_v1 = vld [vmem:[%s225_s10 + $0x8] sm:$0xff] (%p58_p3) }
  0x10   : > { %v242_v2 = vld [vmem:[%s225_s10 + $0x40] sm:$0xff] (%p58_p3)  ;;  %239 = vst [vmem:[%s222_s11] sm:$0xff] (%p58_p3), %v238_v0  ;;  %v244_v3 = vld [vmem:[%s225_s10 + $0x48] sm:$0xff] (%p58_p3) }
  0x11   : > { %241 = vst [vmem:[%s222_s11 + $0x8] sm:$0xff] %v240_v1 }
  0x12   : > { %243 = vst [vmem:[%s222_s11 + $0x10] sm:$0xff] %v242_v2 }
  0x13   : > { %245 = vst [vmem:[%s222_s11 + $0x18] sm:$0xff] %v244_v3 }
  0x14 PF: > { %p607_p5 = scmp.ge.s32.totalorder %s692_s23, 1  ;;  %p259_p6 = scmp.lt.s32.totalorder %s692_s23, 5 }
  0x16   : > { %p260_p7 = pnand %p607_p5, %p259_p6 }
  0x17   : > { %s266_s12 = sand.u32 (!%p260_p7), 1, %s684_s21   ;;  %s609_s13 = sshll.u32 (!%p260_p7), %s600_s24, 2 }
  0x18   : > { %263 = sbr.rel (%p260_p7) target bundleno = 194 (0xc2), region = 63  ;;  %s608_s14 = sshll.u32 (!%p260_p7), %s266_s12, 5 }
  0x19   : > { %p306_p8 = scmp.lt.s32.totalorder (!%p260_p7), %s609_s13, 15  ;;  %s268_s15 = scalar_lea.vmem (!%p260_p7), [#allocation2], %s608_s14 }
  0x1d   : > { %v617_v4 = vld [vmem:[%s268_s15] sm:$0xf]  ;;  %v644_v5 = vld [vmem:[%s268_s15 + $0xc] sm:$0xf0]  ;;  %v642_v6 = vld [vmem:[%s268_s15 + $0x4] sm:$0xf] }
  0x1e   : > { %v618_v7 = vor.u32 %v644_v5, %v617_v4  ;;  %v619_v8 = vld [vmem:[%s268_s15 + $0x10] sm:$0xf0]  ;;  %v625_v9 = vld [vmem:[%s268_s15 + $0x8] sm:$0xf]  ;;  %v645_v10 = vld [vmem:[%s268_s15 + $0x14] sm:$0xf0] }
  0x1f   : > { %v622_v11 = vor.u32 %v642_v6, %v619_v8  ;;  %v626_v12 = vor.u32 %v645_v10, %v625_v9  ;;  %v643_v13 = vld [vmem:[%s268_s15 + $0xc] sm:$0xf]  ;;  %v627_v14 = vld [vmem:[%s268_s15 + $0x18] sm:$0xf0]  ;;  %s824_s13 = smov (!%p306_p8, %s609_s13), 15  ;;  %vm353_vm0 = vcmask 130048  }
  0x20   : > { %364 = vmatpush.bf16.msra.mxu0 %v618_v7  ;;  %v630_v15 = vor.u32 %v643_v13, %v627_v14  ;;  %v328_v16 = vld [vmem:[%s816_s3] sm:$0xf]  ;;  %s610_s18 = sshll.u32 %s824_s13, 2  ;;  %vm423_vm1 = vcmask 1043456   ;;  %vm419_vm2 = vcmask 64512   ;;  %v489_v46 = vld [vmem:[%s817_s4 + $0x8] sm:$0xff] }
  0x21   : > { %377 = vmatpush.bf16.msra.mxu1 %v622_v11  ;;  %390 = vmatpush.bf16.msra.mxu2 %v626_v12  ;;  %s309_s21 = scalar_lea.vmem %s813_s0, %s610_s18  ;;  %v325_v31 = vld [vmem:[%s815_s2] sm:$0xf]  ;;  %s316_s29 = scalar_lea.vmem %s818_s5, %s610_s18  ;;  %v490_v56 = vld [vmem:[%s817_s4 + $0x10] sm:$0xff]  ;;  %v491_v61 = vld [vmem:[%s817_s4 + $0x18] sm:$0xff] }
  0x22   : > { %403 = vmatpush.bf16.msra.mxu3 %v630_v15  ;;  %v327_v17 = vld [vmem:[%s309_s21 + $0x8] sm:$0xff]  ;;  %v326_v18 = vld [vmem:[%s309_s21] sm:$0xff]  ;;  %s614_s10 = sshll.u32 %s824_s13, 3 }
  0x23   : > { %631 = vmatmul.msk.bf16.vlgmr.msra.gmra.mxu0 %vm353_vm0, %v328_v16  ;;  %v413_v19 = vunpack.c.l.b16 %v327_v17  ;;  %v414_v20 = vunpack.c.h.b16 %v327_v17  ;;  %v411_v21 = vunpack.c.l.b16 %v326_v18  ;;  %v412_v22 = vunpack.c.h.b16 %v326_v18  ;;  %v496_v38 = vld [vmem:[%s316_s29] sm:$0xff]  ;;  %v497_v52 = vld [vmem:[%s316_s29 + $0x8] sm:$0xff]  ;;  %s322_s14 = scalar_lea.vmem %s819_s6, %s614_s10 }
  0x24   : > { %632 = vmatmul.msk.bf16.vlgmr.msra.gmra.mxu1 %vm353_vm0, %v328_v16  ;;  %633 = vmatmul.msk.bf16.vlgmr.msra.gmra.mxu2 %vm353_vm0, %v328_v16  ;;  %v488_v42 = vld [vmem:[%s817_s4] sm:$0xff]  ;;  %v498_v44 = vunpack.c.l.bf16 %v496_v38  ;;  %v499_v48 = vunpack.c.h.bf16 %v496_v38  ;;  %v500_v59 = vunpack.c.l.bf16 %v497_v52  ;;  %v501_v0 = vunpack.c.h.bf16 %v497_v52 }
  0x25   : > { %634 = vmatmul.msk.bf16.vlgmr.msra.gmra.mxu3 %vm353_vm0, %v328_v16  ;;  %v417_v23 = vpack.c.b16 %v413_v19, %v413_v19  ;;  %v418_v24 = vpack.c.b16 %v414_v20, %v414_v20  ;;  %v415_v25 = vpack.c.b16 %v411_v21, %v411_v21  ;;  %v416_v26 = vpack.c.b16 %v412_v22, %v412_v22 }
  0x27   : > { %v431_v27 = vsel %vm423_vm1, %v417_v23, 0  ;;  %v434_v28 = vsel %vm423_vm1, %v418_v24, 0  ;;  %v425_v29 = vsel %vm423_vm1, %v415_v25, 0  ;;  %v428_v30 = vsel %vm423_vm1, %v416_v26, 0 }
  0x28   : > { %469 = vmatpush.bf16.msrb.mxu2 %v431_v27  ;;  %482 = vmatpush.bf16.msrb.mxu3 %v434_v28 }
  0x29   : > { %443 = vmatpush.bf16.msrb.mxu0 %v425_v29  ;;  %456 = vmatpush.bf16.msrb.mxu1 %v428_v30 }
  0x33   : > { %635 = vmatmul.msk.bf16.vlgmr.msrb.gmra.mxu0 %vm419_vm2, %v325_v31 }
  0x34   : > { %636 = vmatmul.msk.bf16.vlgmr.msrb.gmra.mxu1 %vm419_vm2, %v325_v31  ;;  %637 = vmatmul.msk.bf16.vlgmr.msrb.gmra.mxu2 %vm419_vm2, %v325_v31 }
  0x35   : > { %638 = vmatmul.msk.bf16.vlgmr.msrb.gmra.mxu3 %vm419_vm2, %v325_v31 }
  0xa0   : > { %v366_v32 = vpop.f32.mrf.mxu0 }
  0xa1   : > { %v379_v33 = vpop.f32.mrf.mxu1 }
  0xa7   : > { %v392_v34 = vpop.f32.mrf.mxu2 }
  0xa8   : > { %v405_v35 = vpop.f32.mrf.mxu3  ;;  %v368_v36 = vpop.f32.mrf.mxu0 }
  0xa9   : > { %v381_v37 = vpop.f32.mrf.mxu1 }
  0xaf   : > { %v394_v39 = vpop.f32.mrf.mxu2 }
  0xb0   : > { %v407_v40 = vpop.f32.mrf.mxu3  ;;  %v445_v41 = vpop.f32.mrf.mxu0 }
  0xb1   : > { %v446_v43 = vadd.f32 %v445_v41, %v366_v32  ;;  %v458_v45 = vpop.f32.mrf.mxu1 }
  0xb2   : > { %v459_v47 = vadd.f32 %v458_v45, %v379_v33 }
  0xb3   : > { %v492_v49 = vadd.f32 %v488_v42, %v446_v43 }
  0xb4   : > { %v493_v50 = vadd.f32 %v489_v46, %v459_v47 }
  0xb5   : > { %v502_v51 = vadd.f32 %v498_v44, %v492_v49 }
  0xb6   : > { %v503_v53 = vadd.f32 %v499_v48, %v493_v50 }
  0xb7   : > { %v506_v54 = vmax.f32 %v502_v51, 0.0  ;;  %v471_v55 = vpop.f32.mrf.mxu2 }
  0xb8   : > { %v507_v57 = vmax.f32 %v503_v53, 0.0  ;;  %v472_v58 = vadd.f32 %v471_v55, %v392_v34  ;;  %v484_v60 = vpop.f32.mrf.mxu3  ;;  %v447_v62 = vpop.f32.mrf.mxu0 }
  0xb9   : > { %510 = vst [vmem:[%s322_s14] sm:$0xff] %v506_v54  ;;  %v485_v63 = vadd.f32 %v484_v60, %v405_v35  ;;  %v460_v1 = vpop.f32.mrf.mxu1 }
  0xba   : > { %511 = vst [vmem:[%s322_s14 + $0x8] sm:$0xff] %v507_v57  ;;  %v494_v2 = vadd.f32 %v490_v56, %v472_v58 }
  0xbb   : > { %v495_v3 = vadd.f32 %v491_v61, %v485_v63 }
  0xbc   : > { %v504_v4 = vadd.f32 %v500_v59, %v494_v2 }
  0xbd   : > { %v505_v5 = vadd.f32 %v501_v0, %v495_v3 }
  0xbe   : > { %v508_v6 = vmax.f32 %v504_v4, 0.0 }
  0xbf   : > { %v509_v7 = vmax.f32 %v505_v5, 0.0  ;;  %v473_v8 = vpop.f32.mrf.mxu2 }
  0xc0   : > { %512 = vst [vmem:[%s322_s14 + $0x10] sm:$0xff] %v508_v6  ;;  %v486_v9 = vpop.f32.mrf.mxu3 }
  0xc1   : > { %513 = vst [vmem:[%s322_s14 + $0x18] sm:$0xff] %v509_v7 }
  0xc2 PF: > { %p13_p9 = scmp.ge.s32.totalorder %s746_s25, 6   ;;  %s820_s21 = smov %s688_s22 }
  0xc3   : > { %s821_s22 = smov %s755_s28  ;;  %s822_s23 = smov %s746_s25 }
  0xc4   :  { %15 = sbr.rel (!%p13_p9) target bundleno = 2 (0x2), region = 108 }

</bundles_post_ra>
